<compile_context>
chip_gen: v6e
topology: v6e:2x2x1
jax: 0.10.0
libtpu: 0.0.40
codegen_flags: <defaults>
</compile_context>

<pallas_src>
import functools

import jax
import jax.numpy as jnp
from jax.experimental import pallas as pl
from jax.experimental.pallas import tpu as pltpu

_LANE = 128
_SUBLANE = 8


def _round_up(x, m):
    return (x + m - 1) // m * m


def _choose_batch_tile(B, *, max_tile=512, target_grid_steps=4):
    """Pick the batch (M) tile.

    - tiny B: one tile covering everything (grid=(1,)), rounded up to the
      sublane count (8).
    - moderate B: aim for >= target_grid_steps grid steps so the 'parallel'
      batch axis can be split across TensorCores (v7x megacore).
    - large B: cap at max_tile rows so per-step f32 intermediates stay a few
      hundred KiB of VMEM.
    """
    if B <= max_tile:
        if B >= target_grid_steps * _SUBLANE:
            tb = _round_up(-(-B // target_grid_steps), _SUBLANE)
        else:
            tb = _round_up(B, _SUBLANE)
    else:
        tb = max_tile
    return max(_SUBLANE, min(tb, _round_up(B, _SUBLANE)))


def _mlp_kernel(x_ref,
                w1_ref, b1_ref,
                w2_ref, b2_ref,
                w3_ref, b3_ref,
                w4_ref, b4_ref,
                o_ref, *, compute_dtype):
    """Fused 4-layer MLP forward on one batch tile (weights VMEM-resident)."""
    cd = compute_dtype

    x = x_ref[...]  # already compute_dtype (cast in the wrapper)

    h = jnp.dot(x, w1_ref[...], preferred_element_type=jnp.float32) + b1_ref[...]
    h = jnp.maximum(h, 0.0).astype(cd)

    h = jnp.dot(h, w2_ref[...], preferred_element_type=jnp.float32) + b2_ref[...]
    h = jnp.maximum(h, 0.0).astype(cd)

    h = jnp.dot(h, w3_ref[...], preferred_element_type=jnp.float32) + b3_ref[...]
    h = jnp.maximum(h, 0.0).astype(cd)

    z = jnp.dot(h, w4_ref[...], preferred_element_type=jnp.float32) + b4_ref[...]

    # Numerically stable sigmoid: exp on the EUP, reciprocal instead of a
    # VPU divide.  sigmoid(z) = 1/(1+e^-z) for z>=0, e^z/(1+e^z) for z<0.
    ez = jnp.exp(-jnp.abs(z))
    inv = pl.reciprocal(1.0 + ez, approx=False)
    sig = jnp.where(z >= 0.0, inv, ez * inv)
    o_ref[...] = sig.astype(o_ref.dtype)


def neuralnetwork_forward(x, params, *, compute_dtype=jnp.float32,
                          max_batch_tile=512):
    """params: dict with w1..w4 ([fan_in, fan_out]) and b1..b4 ([1, fan_out])."""
    B, in_dim = x.shape
    out_dim = params["w4"].shape[1]
    out_pad = _round_up(out_dim, _LANE)

    # Lane-dense output: pad the final layer to a multiple of 128 lanes so the
    # epilogue issues full (unmasked) vector stores; slice back afterwards.
    w4, b4 = params["w4"], params["b4"]
    if out_pad != out_dim:
        w4 = jnp.pad(w4, ((0, 0), (0, out_pad - out_dim)))
        b4 = jnp.pad(b4, ((0, 0), (0, out_pad - out_dim)))

    # Matmul inputs in compute_dtype (e.g. bf16), f32 accumulation on the MXU.
    # Biases stay f32: they're added to the f32 accumulator in the epilogue.
    xc = x.astype(compute_dtype)
    ws = [params["w1"].astype(compute_dtype),
          params["w2"].astype(compute_dtype),
          params["w3"].astype(compute_dtype),
          w4.astype(compute_dtype)]
    bs = [params["b1"].astype(jnp.float32),
          params["b2"].astype(jnp.float32),
          params["b3"].astype(jnp.float32),
          b4.astype(jnp.float32)]

    tb = _choose_batch_tile(B, max_tile=max_batch_tile)
    grid = (pl.cdiv(B, tb),)

    def full_spec(arr):
        # Whole weight/bias resident every grid step; constant block index, so
        # Pallas keeps it in VMEM and does not re-DMA it across iterations.
        return pl.BlockSpec(arr.shape, lambda i: (0, 0))

    in_specs = [pl.BlockSpec((tb, in_dim), lambda i: (i, 0))]
    operands = [xc]
    for w, b in zip(ws, bs):
        in_specs += [full_spec(w), full_spec(b)]
        operands += [w, b]

    out_spec = pl.BlockSpec((tb, out_pad), lambda i: (i, 0))

    # Advisory cost estimate so XLA schedules/overlaps the call sensibly.
    h1, h2, h3 = ws[0].shape[1], ws[1].shape[1], ws[2].shape[1]
    flops = 2 * B * (in_dim * h1 + h1 * h2 + h2 * h3 + h3 * out_pad)
    weight_bytes = sum(int(a.size) * a.dtype.itemsize for a in ws + bs)
    bytes_accessed = (int(xc.size) * xc.dtype.itemsize
                      + B * out_pad * 4 + weight_bytes)
    cost = pl.CostEstimate(flops=int(flops),
                           transcendentals=int(B * out_pad),
                           bytes_accessed=int(bytes_accessed))

    fn = pl.pallas_call(
        functools.partial(_mlp_kernel, compute_dtype=compute_dtype),
        out_shape=jax.ShapeDtypeStruct((B, out_pad), jnp.float32),
        grid_spec=pltpu.PrefetchScalarGridSpec(
            num_scalar_prefetch=0,
            grid=grid,
            in_specs=in_specs,
            out_specs=out_spec,
        ),
        compiler_params=pltpu.CompilerParams(
            dimension_semantics=("parallel",),
            vmem_limit_bytes=32 * 1024 * 1024),
        cost_estimate=cost,
    )
    out = fn(*operands)
    return out[:, :out_dim]


def init_params(key, in_dim, n_hidden, out_dim):
    """Deterministic PyTorch-style init: U(-1/sqrt(fan_in), 1/sqrt(fan_in))."""
    dims = [in_dim, 4 * n_hidden, 2 * n_hidden, n_hidden, out_dim]
    params = {}
    for li in range(4):
        fan_in, fan_out = dims[li], dims[li + 1]
        key, kw, kb = jax.random.split(key, 3)
        bound = 1.0 / jnp.sqrt(jnp.float32(fan_in))
        params[f"w{li + 1}"] = jax.random.uniform(
            kw, (fan_in, fan_out), jnp.float32, -bound, bound)
        params[f"b{li + 1}"] = jax.random.uniform(
            kb, (1, fan_out), jnp.float32, -bound, bound)
    return params


def _reference_forward(x, params):
    h = jnp.maximum(x @ params["w1"] + params["b1"], 0.0)
    h = jnp.maximum(h @ params["w2"] + params["b2"], 0.0)
    h = jnp.maximum(h @ params["w3"] + params["b3"], 0.0)
    return jax.nn.sigmoid(h @ params["w4"] + params["b4"])


if __name__ == "__main__":
    key = jax.random.PRNGKey(0)
    k_param, k_x1, k_x2 = jax.random.split(key, 3)

    in_dim, n_hidden, out_dim = 16, 32, 8
    params = init_params(k_param, in_dim, n_hidden, out_dim)

    # Small batch: single tile, grid=(1,).
    B0 = 8
    x0 = jax.random.normal(k_x1, (B0, in_dim), jnp.float32)
    out0 = jax.block_until_ready(neuralnetwork_forward(x0, params))
    ref0 = _reference_forward(x0, params)
    assert out0.shape == (B0, out_dim)
    assert jnp.allclose(out0, ref0, atol=1e-5, rtol=1e-5), "mismatch (small B)"

    # Larger ragged batch: multi-step 'parallel' grid (v7x megacore) plus a
    # padded tail block whose extra rows are discarded by Pallas.
    B1 = 200
    x1 = jax.random.normal(k_x2, (B1, in_dim), jnp.float32)
    out1 = jax.block_until_ready(neuralnetwork_forward(x1, params))
    ref1 = _reference_forward(x1, params)
    assert out1.shape == (B1, out_dim)
    assert jnp.allclose(out1, ref1, atol=1e-5, rtol=1e-5), "mismatch (large B)"

    # bf16 matmul inputs with f32 accumulation (fast path on v6e/v7x).
    out_bf16 = jax.block_until_ready(
        neuralnetwork_forward(x1, params, compute_dtype=jnp.bfloat16))
    assert out_bf16.shape == (B1, out_dim)
    assert jnp.allclose(out_bf16, ref1, atol=5e-2, rtol=0.0), "mismatch (bf16)"

    print("KERNEL_OK")
</pallas_src>

<mosaic_0001>
module attributes {stable_mosaic.version = 11 : i64} {
  func.func @_mlp_kernel(%arg0: i32, %arg1: memref<8x16xf32, #tpu.memory_space<vmem>>, %arg2: memref<16x128xf32, #tpu.memory_space<vmem>>, %arg3: memref<1x128xf32, #tpu.memory_space<vmem>>, %arg4: memref<128x64xf32, #tpu.memory_space<vmem>>, %arg5: memref<1x64xf32, #tpu.memory_space<vmem>>, %arg6: memref<64x32xf32, #tpu.memory_space<vmem>>, %arg7: memref<1x32xf32, #tpu.memory_space<vmem>>, %arg8: memref<32x128xf32, #tpu.memory_space<vmem>>, %arg9: memref<1x128xf32, #tpu.memory_space<vmem>>, %arg10: memref<8x128xf32, #tpu.memory_space<vmem>>) attributes {dimension_semantics = [#tpu.dimension_semantics<parallel>], iteration_bounds = array<i64: 1>, scalar_prefetch = 0 : i64, scratch_operands = 0 : i64, tpu.core_type = #tpu.core_type<tc>, window_params = [{transform_indices = @transform_0, window_bounds = array<i64: 8, 16>}, {pipeline_mode = #tpu.pipeline_mode<synchronous>, transform_indices = @transform_1, window_bounds = array<i64: 16, 128>}, {pipeline_mode = #tpu.pipeline_mode<synchronous>, transform_indices = @transform_2, window_bounds = array<i64: 1, 128>}, {pipeline_mode = #tpu.pipeline_mode<synchronous>, transform_indices = @transform_3, window_bounds = array<i64: 128, 64>}, {pipeline_mode = #tpu.pipeline_mode<synchronous>, transform_indices = @transform_4, window_bounds = array<i64: 1, 64>}, {pipeline_mode = #tpu.pipeline_mode<synchronous>, transform_indices = @transform_5, window_bounds = array<i64: 64, 32>}, {pipeline_mode = #tpu.pipeline_mode<synchronous>, transform_indices = @transform_6, window_bounds = array<i64: 1, 32>}, {pipeline_mode = #tpu.pipeline_mode<synchronous>, transform_indices = @transform_7, window_bounds = array<i64: 32, 128>}, {pipeline_mode = #tpu.pipeline_mode<synchronous>, transform_indices = @transform_8, window_bounds = array<i64: 1, 128>}, {transform_indices = @transform_9, window_bounds = array<i64: 8, 128>}]} {
    %c0 = arith.constant 0 : index
    %c0_0 = arith.constant 0 : index
    %0 = vector.load %arg1[%c0, %c0_0] : memref<8x16xf32, #tpu.memory_space<vmem>>, vector<8x16xf32>
    %c0_1 = arith.constant 0 : index
    %c0_2 = arith.constant 0 : index
    %1 = vector.load %arg2[%c0_1, %c0_2] : memref<16x128xf32, #tpu.memory_space<vmem>>, vector<16x128xf32>
    %cst = arith.constant dense<0.000000e+00> : vector<8x128xf32>
    %2 = tpu.matmul %0, %1, %cst {dimension_numbers = #tpu.dot_dimension_numbers<[1], [0], [0], [1], [0, 0, 1, 1], [], []>} : vector<8x16xf32>, vector<16x128xf32>, vector<8x128xf32> -> vector<8x128xf32>
    %c0_3 = arith.constant 0 : index
    %c0_4 = arith.constant 0 : index
    %3 = vector.load %arg3[%c0_3, %c0_4] : memref<1x128xf32, #tpu.memory_space<vmem>>, vector<1x128xf32>
    %4 = vector.broadcast %3 : vector<1x128xf32> to vector<8x128xf32>
    %5 = arith.addf %2, %4 : vector<8x128xf32>
    %cst_5 = arith.constant 0.000000e+00 : f32
    %6 = vector.broadcast %cst_5 : f32 to vector<8x128xf32>
    %7 = arith.maximumf %5, %6 : vector<8x128xf32>
    %c0_6 = arith.constant 0 : index
    %c0_7 = arith.constant 0 : index
    %8 = vector.load %arg4[%c0_6, %c0_7] : memref<128x64xf32, #tpu.memory_space<vmem>>, vector<128x64xf32>
    %cst_8 = arith.constant dense<0.000000e+00> : vector<8x64xf32>
    %9 = tpu.matmul %7, %8, %cst_8 {dimension_numbers = #tpu.dot_dimension_numbers<[1], [0], [0], [1], [0, 0, 1, 1], [], []>} : vector<8x128xf32>, vector<128x64xf32>, vector<8x64xf32> -> vector<8x64xf32>
    %c0_9 = arith.constant 0 : index
    %c0_10 = arith.constant 0 : index
    %10 = vector.load %arg5[%c0_9, %c0_10] : memref<1x64xf32, #tpu.memory_space<vmem>>, vector<1x64xf32>
    %11 = vector.broadcast %10 : vector<1x64xf32> to vector<8x64xf32>
    %12 = arith.addf %9, %11 : vector<8x64xf32>
    %cst_11 = arith.constant 0.000000e+00 : f32
    %13 = vector.broadcast %cst_11 : f32 to vector<8x64xf32>
    %14 = arith.maximumf %12, %13 : vector<8x64xf32>
    %c0_12 = arith.constant 0 : index
    %c0_13 = arith.constant 0 : index
    %15 = vector.load %arg6[%c0_12, %c0_13] : memref<64x32xf32, #tpu.memory_space<vmem>>, vector<64x32xf32>
    %cst_14 = arith.constant dense<0.000000e+00> : vector<8x32xf32>
    %16 = tpu.matmul %14, %15, %cst_14 {dimension_numbers = #tpu.dot_dimension_numbers<[1], [0], [0], [1], [0, 0, 1, 1], [], []>} : vector<8x64xf32>, vector<64x32xf32>, vector<8x32xf32> -> vector<8x32xf32>
    %c0_15 = arith.constant 0 : index
    %c0_16 = arith.constant 0 : index
    %17 = vector.load %arg7[%c0_15, %c0_16] : memref<1x32xf32, #tpu.memory_space<vmem>>, vector<1x32xf32>
    %18 = vector.broadcast %17 : vector<1x32xf32> to vector<8x32xf32>
    %19 = arith.addf %16, %18 : vector<8x32xf32>
    %cst_17 = arith.constant 0.000000e+00 : f32
    %20 = vector.broadcast %cst_17 : f32 to vector<8x32xf32>
    %21 = arith.maximumf %19, %20 : vector<8x32xf32>
    %c0_18 = arith.constant 0 : index
    %c0_19 = arith.constant 0 : index
    %22 = vector.load %arg8[%c0_18, %c0_19] : memref<32x128xf32, #tpu.memory_space<vmem>>, vector<32x128xf32>
    %cst_20 = arith.constant dense<0.000000e+00> : vector<8x128xf32>
    %23 = tpu.matmul %21, %22, %cst_20 {dimension_numbers = #tpu.dot_dimension_numbers<[1], [0], [0], [1], [0, 0, 1, 1], [], []>} : vector<8x32xf32>, vector<32x128xf32>, vector<8x128xf32> -> vector<8x128xf32>
    %c0_21 = arith.constant 0 : index
    %c0_22 = arith.constant 0 : index
    %24 = vector.load %arg9[%c0_21, %c0_22] : memref<1x128xf32, #tpu.memory_space<vmem>>, vector<1x128xf32>
    %25 = vector.broadcast %24 : vector<1x128xf32> to vector<8x128xf32>
    %26 = arith.addf %23, %25 : vector<8x128xf32>
    %27 = math.absf %26 : vector<8x128xf32>
    %cst_23 = arith.constant 0.000000e+00 : f32
    %28 = vector.broadcast %cst_23 : f32 to vector<8x128xf32>
    %29 = arith.subf %28, %27 : vector<8x128xf32>
    %30 = math.exp %29 : vector<8x128xf32>
    %cst_24 = arith.constant 1.000000e+00 : f32
    %31 = vector.broadcast %cst_24 : f32 to vector<8x128xf32>
    %32 = arith.addf %31, %30 : vector<8x128xf32>
    %33 = tpu.reciprocal %32 : vector<8x128xf32> -> vector<8x128xf32>
    %cst_25 = arith.constant 0.000000e+00 : f32
    %34 = vector.broadcast %cst_25 : f32 to vector<8x128xf32>
    %35 = arith.cmpf oge, %26, %34 : vector<8x128xf32>
    %36 = arith.mulf %30, %33 : vector<8x128xf32>
    %37 = arith.select %35, %33, %36 : vector<8x128xi1>, vector<8x128xf32>
    %c0_26 = arith.constant 0 : index
    %c0_27 = arith.constant 0 : index
    %38 = vector.load %arg10[%c0_26, %c0_27] : memref<8x128xf32, #tpu.memory_space<vmem>>, vector<8x128xf32>
    tpu.vector_store %arg10[%c0_26, %c0_27], %37 {strides = array<i32>} : memref<8x128xf32, #tpu.memory_space<vmem>>, vector<8x128xf32>,
    return
  }
  func.func @transform_0(%arg0: i32) -> (i32, i32) {
    %c0_i32 = arith.constant 0 : i32
    %c0_i32_0 = arith.constant 0 : i32
    return %arg0, %c0_i32 : i32, i32
  }
  func.func @transform_1(%arg0: i32) -> (i32, i32) {
    %c0_i32 = arith.constant 0 : i32
    %c0_i32_0 = arith.constant 0 : i32
    %c0_i32_1 = arith.constant 0 : i32
    return %c0_i32, %c0_i32_0 : i32, i32
  }
  func.func @transform_2(%arg0: i32) -> (i32, i32) {
    %c0_i32 = arith.constant 0 : i32
    %c0_i32_0 = arith.constant 0 : i32
    %c0_i32_1 = arith.constant 0 : i32
    return %c0_i32, %c0_i32_0 : i32, i32
  }
  func.func @transform_3(%arg0: i32) -> (i32, i32) {
    %c0_i32 = arith.constant 0 : i32
    %c0_i32_0 = arith.constant 0 : i32
    %c0_i32_1 = arith.constant 0 : i32
    return %c0_i32, %c0_i32_0 : i32, i32
  }
  func.func @transform_4(%arg0: i32) -> (i32, i32) {
    %c0_i32 = arith.constant 0 : i32
    %c0_i32_0 = arith.constant 0 : i32
    %c0_i32_1 = arith.constant 0 : i32
    return %c0_i32, %c0_i32_0 : i32, i32
  }
  func.func @transform_5(%arg0: i32) -> (i32, i32) {
    %c0_i32 = arith.constant 0 : i32
    %c0_i32_0 = arith.constant 0 : i32
    %c0_i32_1 = arith.constant 0 : i32
    return %c0_i32, %c0_i32_0 : i32, i32
  }
  func.func @transform_6(%arg0: i32) -> (i32, i32) {
    %c0_i32 = arith.constant 0 : i32
    %c0_i32_0 = arith.constant 0 : i32
    %c0_i32_1 = arith.constant 0 : i32
    return %c0_i32, %c0_i32_0 : i32, i32
  }
  func.func @transform_7(%arg0: i32) -> (i32, i32) {
    %c0_i32 = arith.constant 0 : i32
    %c0_i32_0 = arith.constant 0 : i32
    %c0_i32_1 = arith.constant 0 : i32
    return %c0_i32, %c0_i32_0 : i32, i32
  }
  func.func @transform_8(%arg0: i32) -> (i32, i32) {
    %c0_i32 = arith.constant 0 : i32
    %c0_i32_0 = arith.constant 0 : i32
    %c0_i32_1 = arith.constant 0 : i32
    return %c0_i32, %c0_i32_0 : i32, i32
  }
  func.func @transform_9(%arg0: i32) -> (i32, i32) {
    %c0_i32 = arith.constant 0 : i32
    %c0_i32_0 = arith.constant 0 : i32
    return %arg0, %c0_i32 : i32, i32
  }
}

</mosaic_0001>

<bundles_post_ra>
// kernel: tpu_custom_call.1
= control target key start
LH: loop header
LB: loop body
LE: loop exit
PB: predicated region body
PF: predicated region fallthrough
CT: control target
= control target key end

     0   :  { %v553_v1 = vmov 0.0   ;;  %vm554_vm0 = vmmov 0   ;;  %vm43_vm1 = vcmask 130048   ;;  %s752_s0 = inlined_call_operand.vmem [shape: f32[8,16], index: 0, kind: input, shape index: {}]   ;;  %s753_s1 = inlined_call_operand.vmem [shape: f32[16,128], index: 1, kind: input, shape index: {}]   ;;  %s754_s2 = inlined_call_operand.vmem [shape: f32[1,128], index: 2, kind: input, shape index: {}]   ;;  %s755_s3 = inlined_call_operand.vmem [shape: f32[128,64], index: 3, kind: input, shape index: {}]   ;;  %s756_s4 = inlined_call_operand.vmem [shape: f32[1,64], index: 4, kind: input, shape index: {}]   ;;  %s757_s5 = inlined_call_operand.vmem [shape: f32[64,32], index: 5, kind: input, shape index: {}]   ;;  %s758_s6 = inlined_call_operand.vmem [shape: f32[1,32], index: 6, kind: input, shape index: {}]   ;;  %s759_s7 = inlined_call_operand.vmem [shape: f32[32,128], index: 7, kind: input, shape index: {}]   ;;  %s760_s8 = inlined_call_operand.vmem [shape: f32[1,128], index: 8, kind: input, shape index: {}]   ;;  %s761_s9 = inlined_call_operand.hbm [shape: f32[8,128], index: 9, kind: output, shape index: {}]  }
   0x1   :  { %v35_v0 = vld [vmem:[%s753_s1 + $0x8] sm:$0xff]  ;;  %452 = vmatprep.subr.mxu0 %v553_v1  ;;  %v34_v2 = vld [vmem:[%s753_s1] sm:$0xff]  ;;  %456 = vmatprep.mubr.msk.f32.mxu0 %vm554_vm0, %v553_v1  ;;  %v133_v3 = vld [vmem:[%s755_s3 + $0x78] sm:$0xff] }
   0x2   :  { %453 = vmatpush3.msra.mxu0 %v35_v0  ;;  %v33_v4 = vld [vmem:[%s752_s0] sm:$0xff]  ;;  %459 = vmatprep.subr.mxu1 %v553_v1  ;;  %v132_v5 = vld [vmem:[%s755_s3 + $0x70] sm:$0xff]  ;;  %v131_v6 = vld [vmem:[%s755_s3 + $0x68] sm:$0xff] }
   0x3   :  { %454 = vmatprep.subr.mxu0 %v553_v1  ;;  %460 = vmatpush3.msra.mxu1 %v133_v3 }
   0x4   :  { %455 = vmatpush3.msra.mxu0 %v34_v2  ;;  %461 = vmatprep.subr.mxu1 %v553_v1 }
   0x5   :  { %457 = vmatmul.mubr.msk.f32.vlgmr.msra.gmra.mxu0 %vm43_vm1, %v33_v4  ;;  %462 = vmatpush3.msra.mxu1 %v132_v5 }
   0x6   :  { %14 = vsyncpa [#allocation3], 0  ;;  %463 = vmatprep.subr.mxu1 %v553_v1  ;;  %v130_v7 = vld [vmem:[%s755_s3 + $0x60] sm:$0xff]  ;;  %491 = vmatprep.mubr.msk.f32.mxu1 %vm554_vm0, %v553_v1  ;;  %v129_v8 = vld [vmem:[%s755_s3 + $0x58] sm:$0xff]  ;;  %vm227_vm2 = vcmask 523264   ;;  %vm313_vm3 = vcmask 261120  }
   0x7   :  { %464 = vmatpush3.msra.mxu1 %v131_v6  ;;  %494 = vmatprep.subr.mxu0 %v553_v1  ;;  %v128_v9 = vld [vmem:[%s755_s3 + $0x50] sm:$0xff]  ;;  %v127_v10 = vld [vmem:[%s755_s3 + $0x48] sm:$0xff]  ;;  %v126_v11 = vld [vmem:[%s755_s3 + $0x40] sm:$0xff] }
   0x8   :  { %465 = vmatprep.subr.mxu1 %v553_v1  ;;  %510 = vmatprep.mubr.msk.f32.mxu0 %vm554_vm0, %v553_v1  ;;  %v125_v12 = vld [vmem:[%s755_s3 + $0x38] sm:$0xff]  ;;  %v124_v13 = vld [vmem:[%s755_s3 + $0x30] sm:$0xff]  ;;  %v123_v14 = vld [vmem:[%s755_s3 + $0x28] sm:$0xff] }
   0x9   :  { %466 = vmatpush3.msra.mxu1 %v130_v7  ;;  %v122_v15 = vld [vmem:[%s755_s3 + $0x20] sm:$0xff]  ;;  %v121_v16 = vld [vmem:[%s755_s3 + $0x18] sm:$0xff]  ;;  %v120_v17 = vld [vmem:[%s755_s3 + $0x10] sm:$0xff] }
   0xa   :  { %467 = vmatprep.subr.mxu1 %v553_v1  ;;  %v119_v18 = vld [vmem:[%s755_s3 + $0x8] sm:$0xff]  ;;  %v118_v19 = vld [vmem:[%s755_s3] sm:$0xff]  ;;  %v219_v20 = vld [vmem:[%s757_s5 + $0x38] sm:$0xff] }
   0xb   :  { %468 = vmatpush3.msra.mxu1 %v129_v8  ;;  %v218_v21 = vld [vmem:[%s757_s5 + $0x30] sm:$0xff]  ;;  %495 = vmatpush3.msra.mxu0 %v219_v20  ;;  %v217_v22 = vld [vmem:[%s757_s5 + $0x28] sm:$0xff]  ;;  %v216_v23 = vld [vmem:[%s757_s5 + $0x20] sm:$0xff] }
   0xc   :  { %469 = vmatprep.subr.mxu1 %v553_v1  ;;  %496 = vmatprep.subr.mxu0 %v553_v1  ;;  %v215_v24 = vld [vmem:[%s757_s5 + $0x18] sm:$0xff]  ;;  %v411_v25 = vld [vmem:[%s754_s2] ss:$0 sm:$0xff]  ;;  %v214_v30 = vld [vmem:[%s757_s5 + $0x10] sm:$0xff] }
   0xd   :  { %470 = vmatpush3.msra.mxu1 %v128_v9  ;;  %497 = vmatpush3.msra.mxu0 %v218_v21  ;;  %v213_v31 = vld [vmem:[%s757_s5 + $0x8] sm:$0xff]  ;;  %v212_v32 = vld [vmem:[%s757_s5] sm:$0xff]  ;;  %v305_v38 = vld [vmem:[%s759_s7 + $0x18] sm:$0xff] }
   0xe   :  { %471 = vmatprep.subr.mxu1 %v553_v1  ;;  %498 = vmatprep.subr.mxu0 %v553_v1  ;;  %v413_v33 = vld [vmem:[%s756_s4] ss:$0 sm:$0xff]  ;;  %v304_v39 = vld [vmem:[%s759_s7 + $0x10] sm:$0xff]  ;;  %v303_v40 = vld [vmem:[%s759_s7 + $0x8] sm:$0xff] }
   0xf   :  { %472 = vmatpush3.msra.mxu1 %v127_v10  ;;  %499 = vmatpush3.msra.mxu0 %v217_v22  ;;  %v302_v41 = vld [vmem:[%s759_s7] sm:$0xff] }
  0x10   :  { %473 = vmatprep.subr.mxu1 %v553_v1  ;;  %500 = vmatprep.subr.mxu0 %v553_v1  ;;  %v414_v42 = vld [vmem:[%s758_s6] ss:$0 sm:$0xff]  ;;  %s555_s6 = smov [#allocation2]  }
  0x11   :  { %474 = vmatpush3.msra.mxu1 %v126_v11  ;;  %501 = vmatpush3.msra.mxu0 %v216_v23  ;;  %v416_v47 = vld [vmem:[%s760_s8] ss:$0 sm:$0xff]  ;;  %s403_s7 = sshll.u32 %s555_s6, 4  ;;  %s404_s7 = int_to_ptr.vmem [resolvable:$true] %s403_s7 }
  0x12   :  { %475 = vmatprep.subr.mxu1 %v553_v1  ;;  %502 = vmatprep.subr.mxu0 %v553_v1  ;;  %s531_s27 = scalar_lea.vmem %s404_s7, 128  ;;  %p536_p1 = scmp.lt.s32.totalorder %s404_s7, %s404_s7 }
  0x13   :  { %476 = vmatpush3.msra.mxu1 %v125_v12  ;;  %503 = vmatpush3.msra.mxu0 %v215_v24  ;;  %p532_p0 = scmp.ne.s32.totalorder %s404_s7, %s531_s27  ;;  %p537_p2 = scmp.lt.s32.totalorder %s531_s27, %s531_s27 }
  0x14   :  { %477 = vmatprep.subr.mxu1 %v553_v1  ;;  %504 = vmatprep.subr.mxu0 %v553_v1 }
  0x15   :  { %478 = vmatpush3.msra.mxu1 %v124_v13  ;;  %505 = vmatpush3.msra.mxu0 %v214_v30  ;;  %p538_p3 = por %p537_p2, %p536_p1 }
  0x16   :  { %479 = vmatprep.subr.mxu1 %v553_v1  ;;  %506 = vmatprep.subr.mxu0 %v553_v1 }
  0x17   :  { %480 = vmatpush3.msra.mxu1 %v123_v14  ;;  %507 = vmatpush3.msra.mxu0 %v213_v31  ;;  %p539_p4 = pnand %p538_p3, %p532_p0 }
  0x18   :  { %481 = vmatprep.subr.mxu1 %v553_v1  ;;  %508 = vmatprep.subr.mxu0 %v553_v1 }
  0x19   :  { %482 = vmatpush3.msra.mxu1 %v122_v15  ;;  %509 = vmatpush3.msra.mxu0 %v212_v32 }
  0x1a   :  { %483 = vmatprep.subr.mxu1 %v553_v1  ;;  %513 = vmatprep.subr.mxu0 %v553_v1 }
  0x1b   :  { %484 = vmatpush3.msra.mxu1 %v121_v16 }
  0x1c   :  { %485 = vmatprep.subr.mxu1 %v553_v1 }
  0x1d   :  { %486 = vmatpush3.msra.mxu1 %v120_v17 }
  0x1e   :  { %487 = vmatprep.subr.mxu1 %v553_v1 }
  0x1f   :  { %488 = vmatpush3.msra.mxu1 %v119_v18 }
  0x20   :  { %489 = vmatprep.subr.mxu1 %v553_v1 }
  0x21   :  { %490 = vmatpush3.msra.mxu1 %v118_v19 }
  0xc5   :  { %v113_v26 = vpop.f32.mrf.mxu0 }
  0xc6   :  { %v114_v27 = vadd.f32 %v411_v25, %v113_v26 }
  0xc7   :  { %v458_v28 = vpop.f32.mrf.mxu0 }
  0xc8   :  { %v117_v29 = vmax.f32 %v114_v27, 0.0 }
  0xca   :  { %492 = vmatmul.mubr.f32.vlgmr.msra.gmra.mxu1 %v117_v29 }
 0x18a   :  { %v207_v34 = vpop.f32.mrf.mxu1 }
 0x18b   :  { %v208_v35 = vadd.f32 %v413_v33, %v207_v34 }
 0x18c   :  { %v493_v36 = vpop.f32.mrf.mxu1 }
 0x18d   :  { %v211_v37 = vmax.f32 %v208_v35, 0.0 }
 0x18f   :  { %511 = vmatmul.mubr.msk.f32.vlgmr.msra.gmra.mxu0 %vm227_vm2, %v211_v37 }
 0x190   :  { %514 = vmatpush3.msra.mxu0 %v305_v38  ;;  %521 = vmatprep.mubr.msk.f32.mxu0 %vm554_vm0, %v553_v1 }
 0x191   :  { %515 = vmatprep.subr.mxu0 %v553_v1 }
 0x192   :  { %516 = vmatpush3.msra.mxu0 %v304_v39 }
 0x193   :  { %517 = vmatprep.subr.mxu0 %v553_v1 }
 0x194   :  { %518 = vmatpush3.msra.mxu0 %v303_v40 }
 0x195   :  { %519 = vmatprep.subr.mxu0 %v553_v1 }
 0x196   :  { %520 = vmatpush3.msra.mxu0 %v302_v41 }
 0x24f   :  { %v297_v43 = vpop.f32.mrf.mxu0 }
 0x250   :  { %v298_v44 = vadd.f32 %v414_v42, %v297_v43 }
 0x251   :  { %v512_v45 = vpop.f32.mrf.mxu0 }
 0x252   :  { %v301_v46 = vmax.f32 %v298_v44, 0.0 }
 0x254   :  { %522 = vmatmul.mubr.msk.f32.vlgmr.msra.gmra.mxu0 %vm313_vm3, %v301_v46 }
 0x314   :  { %v383_v48 = vpop.f32.mrf.mxu0 }
 0x315   :  { %v384_v49 = vadd.f32 %v416_v47, %v383_v48 }
 0x316   :  { %v523_v50 = vpop.f32.mrf.mxu0 }
 0x317   :  { %v387_v51 = vand.u32 2147483647, %v384_v49  ;;  %vm393_vm4 = vcmp.ge.f32.partialorder %v384_v49, 0.0 }
 0x319   :  { %v388_v52 = vsub.f32 0.0, %v387_v51 }
 0x31b   :  { %v389_v53 = vmul.f32 1.442695, %v388_v52 }
 0x31d   :  { %527 = vpow2.f32 %v389_v53 }
 0x32a   :  { %v528_v54 = vpop.eup %527 }
 0x32b   :  { %v391_v55 = vadd.f32 1.0, %v528_v54 }
 0x32d   :  { %529 = vrcp.f32 %v391_v55 }
 0x33a   :  { %v530_v56 = vpop.eup %529 }
 0x33b   :  { %v394_v57 = vmul.f32 %v530_v56, %v528_v54 }
 0x33d   :  { %v395_v58 = vsel %vm393_vm4, %v530_v56, %v394_v57 }
 0x33e   :  { %396 = vst [vmem:[#allocation2] sm:$0xff] %v395_v58 }
 0x33f   :  { %542 = shalt.err (!%p539_p4)
}
 0x340   :  { %406 = dma.vmem_to_hbm [thread:$0]  %s404_s7, 128, %s761_s9, [#allocation3]  }
 0x341   :  { %551 = dma.done.wait [#allocation3], 128  }
 0x342   :  { %552 = vsyncadd [#allocation3], 4294967168 }
 0x343   :  { %410 = vsyncpa [#allocation3], 1 }

</bundles_post_ra>
